<compile_context>
chip_gen: v5e
topology: v5e:2x2
jax: 0.10.0
libtpu: 0.0.40
codegen_flags: <defaults>
</compile_context>

<pallas_src>
import functools

import jax
import jax.numpy as jnp
from jax.experimental import pallas as pl
from jax.experimental.pallas import tpu as pltpu


def _round_up(x, m):
    return ((x + m - 1) // m) * m


def _vmem_capacity_bytes():
    try:
        return int(pltpu.get_tpu_info().vmem_capacity_bytes)
    except Exception:
        return 64 * 1024 * 1024  # conservative fallback (v7x per-TC VMEM)


def vision_encoder_kernel(x_ref, w_ref, params_ref, o_ref, *, hidden_logical, eps):
    # x_ref: (TM, V) mxu dtype; w_ref: (V, Hp) mxu dtype; params_ref: (3, Hp) f32
    #   row 0 = linear bias, row 1 = layernorm gamma, row 2 = layernorm beta
    # o_ref: (TM, Hp)
    y = jnp.dot(x_ref[...], w_ref[...], preferred_element_type=jnp.float32)
    y = y + params_ref[0:1, :]

    hp = y.shape[-1]
    inv_h = 1.0 / float(hidden_logical)
    # Pad columns of y are exactly zero (zero-padded weight columns + zero-padded bias),
    # so the mean needs no masking -- just divide by the logical hidden size.
    u = jnp.sum(y, axis=-1, keepdims=True) * inv_h
    d = y - u
    if hp != hidden_logical:
        # Mask pad columns out of the variance only (there, y - u == -u != 0).
        col = jax.lax.broadcasted_iota(jnp.int32, y.shape, dimension=1)
        d = jnp.where(col < hidden_logical, d, 0.0)

    s = jnp.sum(d * d, axis=-1, keepdims=True) * inv_h        # biased variance
    inv_std = jax.lax.rsqrt(s + eps)                          # EUP; eps inside sqrt (TF style)
    out = params_ref[1:2, :] * (d * inv_std) + params_ref[2:3, :]
    # Dropout: identity at inference.
    o_ref[...] = out.astype(o_ref.dtype)


@functools.partial(jax.jit, static_argnames=("tile_m", "eps", "mxu_dtype"))
def vision_encoder(visn_input, w, b, gamma, beta, *, tile_m=None, eps=1e-12,
                   mxu_dtype=jnp.bfloat16):
    """visn_input: (B, S, V); w: (V, H) (Linear weight pre-transposed); b/gamma/beta: (H,).

    Returns (B, S, H) = BertLayerNorm(visn_input @ w + b)  (dropout = identity in eval).
    """
    B, S, V = visn_input.shape
    H = w.shape[1]
    R = B * S
    out_dtype = visn_input.dtype

    vmem_cap = _vmem_capacity_bytes()
    if tile_m is None:
        # 128-MiB chips (v5e/v6e) take bigger row tiles; v7x (64 MiB) stays at 256.
        tile_m = 512 if vmem_cap >= 100 * 1024 * 1024 else 256

    mxu_isz = jnp.dtype(mxu_dtype).itemsize
    out_isz = jnp.dtype(out_dtype).itemsize
    granule = 8 * max(1, 4 // mxu_isz)           # 8 rows for f32, 16 for bf16 packing

    # Row tile: MXU-sized, but capped so the grid has >= ~4 steps (megacore balance on v7x).
    steps_target = 4
    tm = min(tile_m, _round_up(max(pl.cdiv(R, steps_target), granule), granule))
    tm = max(granule, _round_up(tm, granule))
    tm = min(tm, _round_up(R, granule))
    grid = (pl.cdiv(R, tm),)                     # cdiv grid: no wrapper-side row padding

    H_pad = _round_up(H, 128)                    # lane-dense output block

    # MXU operands in bf16 (f32 accumulation inside the kernel); epilogue params stay f32.
    x2d = visn_input.reshape(R, V).astype(mxu_dtype)
    if H_pad != H:
        w_p = jnp.pad(w, ((0, 0), (0, H_pad - H)))
        b_p = jnp.pad(b, (0, H_pad - H))
        g_p = jnp.pad(gamma, (0, H_pad - H))
        be_p = jnp.pad(beta, (0, H_pad - H))
    else:
        w_p, b_p, g_p, be_p = w, b, gamma, beta
    w_p = w_p.astype(mxu_dtype)
    params = jnp.stack([b_p, g_p, be_p], axis=0).astype(jnp.float32)   # (3, H_pad)

    kernel = functools.partial(vision_encoder_kernel, hidden_logical=H, eps=eps)

    # Constant-index operands: single-buffered (no pointless double-buffer of the weight).
    def const_spec(shape):
        return pl.BlockSpec(shape, lambda i: (0, 0), pipeline_mode=pl.Buffered(1))

    # VMEM budget: weight single-buffered, x/out tiles double-buffered, f32 temporaries.
    vmem_bytes = (V * H_pad * mxu_isz
                  + 3 * H_pad * 4
                  + 2 * tm * V * mxu_isz
                  + 2 * tm * H_pad * out_isz
                  + 3 * tm * H_pad * 4)
    vmem_ceiling = int(0.75 * vmem_cap)          # leave headroom for Mosaic internal scratch
    vmem_limit = int(min(max(2 * vmem_bytes, 32 * 1024 * 1024), vmem_ceiling))

    cost = pl.CostEstimate(
        flops=2 * R * V * H_pad,
        transcendentals=R,
        bytes_accessed=(R * V * mxu_isz + V * H_pad * mxu_isz
                        + R * H_pad * out_isz + 3 * H_pad * 4),
    )

    out2d = pl.pallas_call(
        kernel,
        out_shape=jax.ShapeDtypeStruct((R, H_pad), out_dtype),
        grid_spec=pltpu.PrefetchScalarGridSpec(
            num_scalar_prefetch=0,
            grid=grid,
            in_specs=[
                pl.BlockSpec((tm, V), lambda i: (i, 0)),   # row tile of input (double-buffered)
                const_spec((V, H_pad)),                    # full weight, resident, single-buffered
                const_spec((3, H_pad)),                    # packed [bias; gamma; beta]
            ],
            out_specs=pl.BlockSpec((tm, H_pad), lambda i: (i, 0)),
        ),
        compiler_params=pltpu.CompilerParams(
            dimension_semantics=("parallel",),             # shards row tiles across v7x's 2 TCs
            vmem_limit_bytes=vmem_limit,
        ),
        cost_estimate=cost,
    )(x2d, w_p, params)

    if H_pad != H:
        out2d = out2d[:, :H]
    return out2d.reshape(B, S, H)


def reference(visn_input, w, b, gamma, beta, eps=1e-12):
    y = jnp.einsum("bsv,vh->bsh", visn_input, w) + b
    u = jnp.mean(y, axis=-1, keepdims=True)
    s = jnp.mean((y - u) ** 2, axis=-1, keepdims=True)
    yn = (y - u) / jnp.sqrt(s + eps)
    return gamma * yn + beta


if __name__ == "__main__":
    # Small shapes consistent with the module: batch=2, seq=8, vision_size=64, hidden=32
    B, S, V, H = 2, 8, 64, 32

    key = jax.random.PRNGKey(0)
    k_x, k_w, k_b, k_g, k_be = jax.random.split(key, 5)

    visn_input = jax.random.normal(k_x, (B, S, V), dtype=jnp.float32)

    # Deterministic synthetic parameters (nn.Linear(V, H), BertLayerNorm(H)).
    w = jax.random.normal(k_w, (V, H), dtype=jnp.float32) * 0.02   # Linear weight (transposed)
    b = jax.random.normal(k_b, (H,), dtype=jnp.float32) * 0.02     # Linear bias
    gamma = jnp.ones((H,), dtype=jnp.float32)                       # BertLayerNorm weight
    beta = jnp.zeros((H,), dtype=jnp.float32)                       # BertLayerNorm bias

    out = vision_encoder(visn_input, w, b, gamma, beta)
    out = jax.block_until_ready(out)
    assert out.shape == (B, S, H)

    # Tight check vs. a reference using the same bf16-rounded MXU operands (f32 accumulation).
    x_bf = visn_input.astype(jnp.bfloat16).astype(jnp.float32)
    w_bf = w.astype(jnp.bfloat16).astype(jnp.float32)
    ref_bf = reference(x_bf, w_bf, b, gamma, beta)
    assert jnp.allclose(out, ref_bf, atol=1e-4, rtol=1e-4), "mismatch vs bf16-operand reference"

    # Sanity check vs. the pure-f32 reference (bounded by bf16 operand rounding).
    ref_f32 = reference(visn_input, w, b, gamma, beta)
    assert jnp.allclose(out, ref_f32, atol=5e-2, rtol=5e-2), "mismatch vs f32 reference"

    print("KERNEL_OK")
</pallas_src>

<mosaic_0001>
module attributes {stable_mosaic.version = 11 : i64} {
  func.func @vision_encoder_kernel(%arg0: i32, %arg1: memref<16x64xbf16, #tpu.memory_space<vmem>>, %arg2: memref<64x128xbf16, #tpu.memory_space<vmem>>, %arg3: memref<3x128xf32, #tpu.memory_space<vmem>>, %arg4: memref<16x128xf32, #tpu.memory_space<vmem>>) attributes {dimension_semantics = [#tpu.dimension_semantics<parallel>], iteration_bounds = array<i64: 1>, scalar_prefetch = 0 : i64, scratch_operands = 0 : i64, tpu.core_type = #tpu.core_type<tc>, window_params = [{transform_indices = @transform_0, window_bounds = array<i64: 16, 64>}, {pipeline_mode = #tpu.pipeline_mode<synchronous>, transform_indices = @transform_1, window_bounds = array<i64: 64, 128>}, {pipeline_mode = #tpu.pipeline_mode<synchronous>, transform_indices = @transform_2, window_bounds = array<i64: 3, 128>}, {transform_indices = @transform_3, window_bounds = array<i64: 16, 128>}]} {
    %c0 = arith.constant 0 : index
    %c0_0 = arith.constant 0 : index
    %0 = vector.load %arg1[%c0, %c0_0] : memref<16x64xbf16, #tpu.memory_space<vmem>>, vector<16x64xbf16>
    %c0_1 = arith.constant 0 : index
    %c0_2 = arith.constant 0 : index
    %1 = vector.load %arg2[%c0_1, %c0_2] : memref<64x128xbf16, #tpu.memory_space<vmem>>, vector<64x128xbf16>
    %cst = arith.constant dense<0.000000e+00> : vector<16x128xf32>
    %2 = tpu.matmul %0, %1, %cst {dimension_numbers = #tpu.dot_dimension_numbers<[1], [0], [0], [1], [0, 0, 1, 1], [], []>} : vector<16x64xbf16>, vector<64x128xbf16>, vector<16x128xf32> -> vector<16x128xf32>
    %c0_3 = arith.constant 0 : index
    %c0_4 = arith.constant 0 : index
    %3 = vector.load %arg3[%c0_3, %c0_4] : memref<3x128xf32, #tpu.memory_space<vmem>>, vector<1x128xf32>
    %4 = vector.broadcast %3 : vector<1x128xf32> to vector<16x128xf32>
    %5 = arith.addf %2, %4 : vector<16x128xf32>
    %cst_5 = arith.constant dense<0.000000e+00> : vector<16xf32>
    %6 = vector.multi_reduction <add>, %5, %cst_5 [1] : vector<16x128xf32> to vector<16xf32>
    %7 = vector.shape_cast %6 : vector<16xf32> to vector<16x1xf32>
    %cst_6 = arith.constant 3.125000e-02 : f32
    %8 = vector.broadcast %cst_6 : f32 to vector<16x1xf32>
    %9 = arith.mulf %7, %8 : vector<16x1xf32>
    %10 = vector.broadcast %9 : vector<16x1xf32> to vector<16x128xf32>
    %11 = arith.subf %5, %10 : vector<16x128xf32>
    %12 = tpu.iota {dimensions = array<i32: 1>} : vector<16x128xi32>
    %c32_i32 = arith.constant 32 : i32
    %13 = vector.broadcast %c32_i32 : i32 to vector<16x128xi32>
    %14 = arith.cmpi slt, %12, %13 : vector<16x128xi32>
    %cst_7 = arith.constant 0.000000e+00 : f32
    %15 = vector.broadcast %cst_7 : f32 to vector<16x128xf32>
    %16 = arith.select %14, %11, %15 : vector<16x128xi1>, vector<16x128xf32>
    %17 = arith.mulf %16, %16 : vector<16x128xf32>
    %cst_8 = arith.constant dense<0.000000e+00> : vector<16xf32>
    %18 = vector.multi_reduction <add>, %17, %cst_8 [1] : vector<16x128xf32> to vector<16xf32>
    %19 = vector.shape_cast %18 : vector<16xf32> to vector<16x1xf32>
    %cst_9 = arith.constant 3.125000e-02 : f32
    %20 = vector.broadcast %cst_9 : f32 to vector<16x1xf32>
    %21 = arith.mulf %19, %20 : vector<16x1xf32>
    %cst_10 = arith.constant 9.99999996E-13 : f32
    %22 = vector.broadcast %cst_10 : f32 to vector<16x1xf32>
    %23 = arith.addf %21, %22 : vector<16x1xf32>
    %24 = math.rsqrt %23 : vector<16x1xf32>
    %c1 = arith.constant 1 : index
    %c0_11 = arith.constant 0 : index
    %25 = vector.load %arg3[%c1, %c0_11] : memref<3x128xf32, #tpu.memory_space<vmem>>, vector<1x128xf32>
    %26 = vector.broadcast %24 : vector<16x1xf32> to vector<16x128xf32>
    %27 = arith.mulf %16, %26 : vector<16x128xf32>
    %28 = vector.broadcast %25 : vector<1x128xf32> to vector<16x128xf32>
    %29 = arith.mulf %28, %27 : vector<16x128xf32>
    %c2 = arith.constant 2 : index
    %c0_12 = arith.constant 0 : index
    %30 = vector.load %arg3[%c2, %c0_12] : memref<3x128xf32, #tpu.memory_space<vmem>>, vector<1x128xf32>
    %31 = vector.broadcast %30 : vector<1x128xf32> to vector<16x128xf32>
    %32 = arith.addf %29, %31 : vector<16x128xf32>
    %c0_13 = arith.constant 0 : index
    %c0_14 = arith.constant 0 : index
    %33 = vector.load %arg4[%c0_13, %c0_14] : memref<16x128xf32, #tpu.memory_space<vmem>>, vector<16x128xf32>
    tpu.vector_store %arg4[%c0_13, %c0_14], %32 {strides = array<i32>} : memref<16x128xf32, #tpu.memory_space<vmem>>, vector<16x128xf32>,
    return
  }
  func.func @transform_0(%arg0: i32) -> (i32, i32) {
    %c0_i32 = arith.constant 0 : i32
    %c0_i32_0 = arith.constant 0 : i32
    return %arg0, %c0_i32 : i32, i32
  }
  func.func @transform_1(%arg0: i32) -> (i32, i32) {
    %c0_i32 = arith.constant 0 : i32
    %c0_i32_0 = arith.constant 0 : i32
    %c0_i32_1 = arith.constant 0 : i32
    return %c0_i32, %c0_i32_0 : i32, i32
  }
  func.func @transform_2(%arg0: i32) -> (i32, i32) {
    %c0_i32 = arith.constant 0 : i32
    %c0_i32_0 = arith.constant 0 : i32
    %c0_i32_1 = arith.constant 0 : i32
    return %c0_i32, %c0_i32_0 : i32, i32
  }
  func.func @transform_3(%arg0: i32) -> (i32, i32) {
    %c0_i32 = arith.constant 0 : i32
    %c0_i32_0 = arith.constant 0 : i32
    return %arg0, %c0_i32 : i32, i32
  }
}

</mosaic_0001>

<bundles_post_ra>
// kernel: vision_encoder.1
= control target key start
LH: loop header
LB: loop body
LE: loop exit
PB: predicated region body
PF: predicated region fallthrough
CT: control target
= control target key end

     0   :  { %vm56_vm0 = vcmask 523264   ;;  %v82_v10 = vlaneseq  ;;  %s216_s1 = inlined_call_operand.vmem [shape: bf16[64,128], index: 1, kind: input, shape index: {}]   ;;  %s217_s2 = inlined_call_operand.vmem [shape: f32[3,128], index: 2, kind: input, shape index: {}]   ;;  %s218_s0 = inlined_call_operand.vmem [shape: bf16[16,64], index: 0, kind: input, shape index: {}]   ;;  %s219_s3 = inlined_call_operand.vmem [shape: f32[16,128], index: 3, kind: output, shape index: {}]  }
   0x1   :  { %v158_v0 = vld [vmem:[%s216_s1 + $0x18] sm:$0xff]  ;;  %v157_v1 = vld [vmem:[%s216_s1 + $0x10] sm:$0xff]  ;;  %v156_v2 = vld [vmem:[%s216_s1 + $0x8] sm:$0xff] }
   0x2   :  { %64 = vmatpush.bf16.msra.mxu0 %v158_v0  ;;  %v155_v3 = vld [vmem:[%s216_s1] sm:$0xff]  ;;  %v83_v11 = vand.u32 127, %v82_v10 }
   0x3   :  { %v154_v4 = vld [vmem:[%s218_s0] sm:$0xff] }
   0x4   :  { %v159_v5 = vld [vmem:[%s217_s2] ss:$0 sm:$0xff]  ;;  %vm84_vm1 = vcmp.lt.s32.totalorder %v83_v11, 32  ;;  %v160_v36 = vld [vmem:[%s217_s2 + $0x1] ss:$0 sm:$0xff] }
   0x5   :  { %v161_v39 = vld [vmem:[%s217_s2 + $0x2] ss:$0 sm:$0xff] }
   0x6   :  { %65 = vmatpush.bf16.msra.mxu0 %v157_v1 }
   0xa   :  { %66 = vmatpush.bf16.msra.mxu0 %v156_v2 }
   0xe   :  { %67 = vmatpush.bf16.msra.mxu0 %v155_v3 }
  0x11   :  { %153 = vmatmul.msk.bf16.vlgmr.msra.gmra.mxu0 %vm56_vm0, %v154_v4 }
  0x8e   :  { %v69_v6 = vpop.f32.mrf.mxu0 }
  0x8f   :  { %v70_v7 = vadd.f32 %v159_v5, %v69_v6 }
  0x91   :  { %74 = vadd.xlane.f32.xlu0 %v70_v7 }
  0x96   :  { %v71_v8 = vpop.f32.mrf.mxu0 }
  0x97   :  { %v72_v9 = vadd.f32 %v159_v5, %v71_v8 }
  0x99   :  { %76 = vadd.xlane.f32.xlu0 %v72_v9 }
 0x104   :  { %v75_v12 = vpop.xlane.xlu0 %74 }
 0x105   :  { %v78_v13 = vmul.f32 0.03125, %v75_v12 }
 0x107   :  { %v80_v14 = vsub.f32 %v70_v7, %v78_v13 }
 0x109   :  { %v85_v15 = vsel %vm84_vm1, %v80_v14, 0.0 }
 0x10a   :  { %v87_v16 = vmul.f32 %v85_v15, %v85_v15 }
 0x10c   :  { %89 = vadd.xlane.f32.xlu1 %v87_v16  ;;  %v77_v17 = vpop.xlane.xlu0 %76 }
 0x10d   :  { %v79_v18 = vmul.f32 0.03125, %v77_v17 }
 0x10f   :  { %v81_v19 = vsub.f32 %v72_v9, %v79_v18 }
 0x111   :  { %v86_v20 = vsel %vm84_vm1, %v81_v19, 0.0 }
 0x112   :  { %v88_v21 = vmul.f32 %v86_v20, %v86_v20 }
 0x114   :  { %91 = vadd.xlane.f32.xlu1 %v88_v21 }
 0x17f   :  { %v90_v22 = vpop.xlane.xlu1 %89 }
 0x180   :  { %v93_v23 = vmul.f32 0.03125, %v90_v22 }
 0x182   :  { %v95_v24 = vadd.f32 1e-12, %v93_v23 }
 0x184   :  { %162 = vrsqrt.f32 %v95_v24  ;;  %vm103_vm3 = vweird.f32 %v95_v24 }
 0x187   :  { %v92_v25 = vpop.xlane.xlu1 %91 }
 0x188   :  { %v94_v26 = vmul.f32 0.03125, %v92_v25 }
 0x18a   :  { %v163_v27 = vpop.eup %162  ;;  %v96_v28 = vadd.f32 1e-12, %v94_v26 }
 0x18b   :  { %v98_v29 = vmul.f32 %v163_v27, %v95_v24  ;;  %vm104_vm2 = vweird.f32 %v163_v27 }
 0x18c   :  { %164 = vrsqrt.f32 %v96_v28  ;;  %vm105_vm4 = vmor %vm103_vm3, %vm104_vm2  ;;  %vm113_vm6 = vweird.f32 %v96_v28 }
 0x18d   :  { %v99_v30 = vmul.f32 %v163_v27, %v98_v29 }
 0x18f   :  { %v100_v31 = vmul.f32 0.5, %v99_v30 }
 0x191   :  { %v101_v32 = vsub.f32 1.5, %v100_v31 }
 0x192   :  { %v165_v33 = vpop.eup %164 }
 0x193   :  { %v102_v34 = vmul.f32 %v163_v27, %v101_v32  ;;  %v108_v35 = vmul.f32 %v165_v33, %v96_v28  ;;  %vm114_vm5 = vweird.f32 %v165_v33 }
 0x194   :  { %vm115_vm7 = vmor %vm113_vm6, %vm114_vm5 }
 0x195   :  { %v106_v37 = vsel %vm105_vm4, %v163_v27, %v102_v34  ;;  %v109_v38 = vmul.f32 %v165_v33, %v108_v35 }
 0x196   :  { %v118_v40 = vmul.f32 %v106_v37, %v85_v15 }
 0x197   :  { %v110_v41 = vmul.f32 0.5, %v109_v38 }
 0x198   :  { %v121_v42 = vmul.f32 %v160_v36, %v118_v40 }
 0x199   :  { %v111_v43 = vsub.f32 1.5, %v110_v41 }
 0x19a   :  { %v125_v44 = vadd.f32 %v161_v39, %v121_v42 }
 0x19b   :  { %v112_v45 = vmul.f32 %v165_v33, %v111_v43 }
 0x19c   :  { %127 = vst [vmem:[%s219_s3] sm:$0xff] %v125_v44 }
 0x19d   :  { %v116_v46 = vsel %vm115_vm7, %v165_v33, %v112_v45 }
 0x19e   :  { %v119_v47 = vmul.f32 %v116_v46, %v86_v20 }
 0x1a0   :  { %v122_v48 = vmul.f32 %v160_v36, %v119_v47 }
 0x1a2   :  { %v126_v49 = vadd.f32 %v161_v39, %v122_v48 }
 0x1a4   :  { %128 = vst [vmem:[%s219_s3 + $0x8] sm:$0xff] %v126_v49 }

</bundles_post_ra>
